<compile_context>
chip_gen: v7x
topology: tpu7x:2x2x1
jax: 0.10.0
libtpu: 0.0.40
codegen_flags: <defaults>
</compile_context>

<pallas_src>
import jax
import jax.numpy as jnp
from jax.experimental import pallas as pl
from jax.experimental.pallas import tpu as pltpu

_LANES = 128
_SUBLANES = 8


def _round_up(x, m):
    return (x + m - 1) // m * m


def _vmem_capacity_bytes():
    try:
        cap = getattr(pltpu.get_tpu_info(), "vmem_capacity_bytes", None)
        if cap:
            return int(cap)
    except Exception:
        pass
    return 128 * 1024 * 1024  # conservative v5e/v6e default


def _focal_partials_kernel(logits_ref, target_ref, wsel_ref, out_ref):
    """Per-tile partials: out row 0, lane 0 = sum(w_i*ce_i); lane 1 = sum(w_i)."""
    x = logits_ref[...].astype(jnp.float32)    # (TN, Cp)
    t = target_ref[...]                        # (TN, 1) int32
    w = wsel_ref[...]                          # (TN, 1) f32; 0 on padded rows
    tn, cp = x.shape

    # Numerically stable logsumexp per row.  Padded classes hold -1e30 (large but
    # FINITE) so exp underflows to exactly 0 -> padding is exact.  Do NOT switch
    # the pad to -inf: fully-padded rows would then produce inf/NaN.
    m = jnp.max(x, axis=-1, keepdims=True)                       # (TN, 1)
    z = x - m
    lse = jnp.log(jnp.sum(jnp.exp(z), axis=-1, keepdims=True))   # (TN, 1)

    # Direct masked select of the target's shifted logit (no onehot cast/multiply).
    col = jax.lax.broadcasted_iota(jnp.int32, (tn, cp), 1)
    z_sel = jnp.sum(jnp.where(col == t, z, 0.0), axis=-1, keepdims=True)

    ce_i = lse - z_sel                                           # per-sample CE (TN, 1)

    num = jnp.sum(w * ce_i)    # padded rows contribute 0 (w == 0 there)
    den = jnp.sum(w)

    # (8,128)-aligned output block: scalars in row 0 / lanes 0-1, zeros elsewhere.
    row = jax.lax.broadcasted_iota(jnp.int32, (_SUBLANES, _LANES), 0)
    lane = jax.lax.broadcasted_iota(jnp.int32, (_SUBLANES, _LANES), 1)
    out_ref[...] = jnp.where((row == 0) & (lane == 0), num,
                             jnp.where((row == 0) & (lane == 1), den, 0.0))


def focal_loss_tpu(logits, target, weight=None, gamma=0.0, block_rows=None):
    """FocalLoss.forward(input, target) -> scalar, via a batch-tiled Pallas kernel."""
    assert gamma >= 0
    n, c = logits.shape
    target = target.astype(jnp.int32)

    # Per-sample class weight gathered outside the kernel (review item 1).
    if weight is None:
        w_i = jnp.ones((n,), jnp.float32)
    else:
        w_i = weight.astype(jnp.float32)[target]

    # Lane-dense class padding: logits -> -1e30 (finite; exact for logsumexp).
    cp = _round_up(max(c, _LANES), _LANES)
    if cp != c:
        logits = jnp.pad(logits, ((0, 0), (0, cp - c)), constant_values=-1e30)

    # Generation-aware tile sizing: biggest logits pipeline buffer that leaves room
    # for 2x double-buffering plus ~3-4x tile of f32 full-width temporaries.
    itemsize = jnp.dtype(logits.dtype).itemsize
    vmem_cap = _vmem_capacity_bytes()
    small_vmem = vmem_cap <= 64 * 1024 * 1024           # v7x-class chips
    if block_rows is None:
        budget = (4 if small_vmem else 8) * 1024 * 1024  # bytes per logits buffer
        block_rows = max(_SUBLANES, budget // (cp * itemsize))
    block_rows = max(_SUBLANES, (int(block_rows) // _SUBLANES) * _SUBLANES)
    block_rows = min(block_rows, _round_up(n, _SUBLANES))

    np_rows = _round_up(n, block_rows)
    if np_rows != n:
        logits = jnp.pad(logits, ((0, np_rows - n), (0, 0)))   # zeros (finite)
        target = jnp.pad(target, (0, np_rows - n))
        w_i = jnp.pad(w_i, (0, np_rows - n))                   # weight 0 -> masked out
    t2 = target.reshape(np_rows, 1)
    w2 = w_i.reshape(np_rows, 1)

    num_tiles = np_rows // block_rows
    vmem_limit = (48 if small_vmem else 80) * 1024 * 1024

    # Each grid step writes its own partial block -> "parallel" batch axis (both
    # TCs / EUPs on v7x); divide + focal transform finalized in plain JAX below.
    partials = pl.pallas_call(
        _focal_partials_kernel,
        out_shape=jax.ShapeDtypeStruct((num_tiles * _SUBLANES, _LANES), jnp.float32),
        grid=(num_tiles,),
        in_specs=[
            pl.BlockSpec((block_rows, cp), lambda i: (i, 0)),   # logits tile
            pl.BlockSpec((block_rows, 1), lambda i: (i, 0)),    # target indices
            pl.BlockSpec((block_rows, 1), lambda i: (i, 0)),    # per-sample weights
        ],
        out_specs=pl.BlockSpec((_SUBLANES, _LANES), lambda i: (i, 0)),
        compiler_params=pltpu.CompilerParams(
            dimension_semantics=("parallel",),
            vmem_limit_bytes=vmem_limit,
        ),
    )(logits, t2, w2)

    num = jnp.sum(partials[:, 0])
    den = jnp.sum(partials[:, 1])       # NaN if all selected weights are 0 (matches torch)
    ce = num / den
    p = jnp.exp(-ce)
    base = jnp.maximum(1.0 - p, 0.0)    # guard against p > 1 from rounding (ce >= 0)
    return base ** float(gamma) * ce


def _focal_loss_ref(logits, target, weight, gamma):
    # pure-JAX reference for correctness checking
    x = logits.astype(jnp.float32)
    lse = jax.scipy.special.logsumexp(x, axis=-1)
    ce_i = lse - jnp.take_along_axis(x, target[:, None], axis=-1)[:, 0]
    w_i = weight[target]
    ce = jnp.sum(w_i * ce_i) / jnp.sum(w_i)
    p = jnp.exp(-ce)
    return (1.0 - p) ** gamma * ce


if __name__ == "__main__":
    key = jax.random.PRNGKey(0)
    N, C = 45, 32           # small demo: 45 samples (forces a partial last tile), 32 classes
    gamma = 2.0             # deterministic "init" of the module's gamma
    # deterministic per-class weight vector (FocalLoss(weight=...) path)
    weight = 0.5 + jnp.arange(C, dtype=jnp.float32) / C

    k_logits, k_target = jax.random.split(key)
    logits = jax.random.normal(k_logits, (N, C), dtype=jnp.float32)
    target = jax.random.randint(k_target, (N,), 0, C, dtype=jnp.int32)

    # block_rows=16 -> 3-step grid: exercises multi-tile partial reduction + row padding
    out = focal_loss_tpu(logits, target, weight=weight, gamma=gamma, block_rows=16)
    out = jax.block_until_ready(out)

    ref = _focal_loss_ref(logits, target, weight, gamma)
    assert jnp.allclose(out, ref, rtol=1e-5, atol=1e-5), (out, ref)

    # also check the unweighted (weight=None) path
    out2 = jax.block_until_ready(focal_loss_tpu(logits, target, gamma=gamma, block_rows=16))
    ref2 = _focal_loss_ref(logits, target, jnp.ones((C,), jnp.float32), gamma)
    assert jnp.allclose(out2, ref2, rtol=1e-5, atol=1e-5), (out2, ref2)

    print("KERNEL_OK")
</pallas_src>

<mosaic_0001>
module attributes {stable_mosaic.version = 11 : i64} {
  func.func @_focal_partials_kernel(%arg0: i32, %arg1: memref<16x128xf32, #tpu.memory_space<vmem>>, %arg2: memref<16x1xi32, #tpu.memory_space<vmem>>, %arg3: memref<16x1xf32, #tpu.memory_space<vmem>>, %arg4: memref<8x128xf32, #tpu.memory_space<vmem>>) attributes {dimension_semantics = [#tpu.dimension_semantics<parallel>], iteration_bounds = array<i64: 3>, scalar_prefetch = 0 : i64, scratch_operands = 0 : i64, tpu.core_type = #tpu.core_type<tc>, window_params = [{transform_indices = @transform_0, window_bounds = array<i64: 16, 128>}, {transform_indices = @transform_1, window_bounds = array<i64: 16, 1>}, {transform_indices = @transform_2, window_bounds = array<i64: 16, 1>}, {transform_indices = @transform_3, window_bounds = array<i64: 8, 128>}]} {
    %c0 = arith.constant 0 : index
    %c0_0 = arith.constant 0 : index
    %0 = vector.load %arg1[%c0, %c0_0] : memref<16x128xf32, #tpu.memory_space<vmem>>, vector<16x128xf32>
    %c0_1 = arith.constant 0 : index
    %c0_2 = arith.constant 0 : index
    %1 = vector.load %arg2[%c0_1, %c0_2] : memref<16x1xi32, #tpu.memory_space<vmem>>, vector<16x1xi32>
    %c0_3 = arith.constant 0 : index
    %c0_4 = arith.constant 0 : index
    %2 = vector.load %arg3[%c0_3, %c0_4] : memref<16x1xf32, #tpu.memory_space<vmem>>, vector<16x1xf32>
    %cst = arith.constant dense<0xFF800000> : vector<16xf32>
    %3 = vector.multi_reduction <maximumf>, %0, %cst [1] : vector<16x128xf32> to vector<16xf32>
    %4 = vector.shape_cast %3 : vector<16xf32> to vector<16x1xf32>
    %5 = vector.broadcast %4 : vector<16x1xf32> to vector<16x128xf32>
    %6 = arith.subf %0, %5 : vector<16x128xf32>
    %7 = math.exp %6 : vector<16x128xf32>
    %cst_5 = arith.constant dense<0.000000e+00> : vector<16xf32>
    %8 = vector.multi_reduction <add>, %7, %cst_5 [1] : vector<16x128xf32> to vector<16xf32>
    %9 = vector.shape_cast %8 : vector<16xf32> to vector<16x1xf32>
    %10 = math.log %9 : vector<16x1xf32>
    %11 = tpu.iota {dimensions = array<i32: 1>} : vector<16x128xi32>
    %12 = vector.broadcast %1 : vector<16x1xi32> to vector<16x128xi32>
    %13 = arith.cmpi eq, %11, %12 : vector<16x128xi32>
    %cst_6 = arith.constant 0.000000e+00 : f32
    %14 = vector.broadcast %cst_6 : f32 to vector<16x128xf32>
    %15 = arith.select %13, %6, %14 : vector<16x128xi1>, vector<16x128xf32>
    %cst_7 = arith.constant dense<0.000000e+00> : vector<16xf32>
    %16 = vector.multi_reduction <add>, %15, %cst_7 [1] : vector<16x128xf32> to vector<16xf32>
    %17 = vector.shape_cast %16 : vector<16xf32> to vector<16x1xf32>
    %18 = arith.subf %10, %17 : vector<16x1xf32>
    %19 = arith.mulf %2, %18 : vector<16x1xf32>
    %20 = vector.shape_cast %19 : vector<16x1xf32> to vector<1x16x1xf32>
    %cst_8 = arith.constant dense<0.000000e+00> : vector<1xf32>
    %21 = vector.multi_reduction <add>, %20, %cst_8 [1, 2] : vector<1x16x1xf32> to vector<1xf32>
    %22 = vector.shape_cast %21 : vector<1xf32> to vector<1x1x1xf32>
    %23 = vector.extract %22[0, 0, 0] : f32 from vector<1x1x1xf32>
    %24 = vector.shape_cast %2 : vector<16x1xf32> to vector<1x16x1xf32>
    %cst_9 = arith.constant dense<0.000000e+00> : vector<1xf32>
    %25 = vector.multi_reduction <add>, %24, %cst_9 [1, 2] : vector<1x16x1xf32> to vector<1xf32>
    %26 = vector.shape_cast %25 : vector<1xf32> to vector<1x1x1xf32>
    %27 = vector.extract %26[0, 0, 0] : f32 from vector<1x1x1xf32>
    %28 = tpu.iota {dimensions = array<i32: 0>} : vector<8x128xi32>
    %29 = tpu.iota {dimensions = array<i32: 1>} : vector<8x128xi32>
    %c0_i32 = arith.constant 0 : i32
    %30 = vector.broadcast %c0_i32 : i32 to vector<8x128xi32>
    %31 = arith.cmpi eq, %28, %30 : vector<8x128xi32>
    %c0_i32_10 = arith.constant 0 : i32
    %32 = vector.broadcast %c0_i32_10 : i32 to vector<8x128xi32>
    %33 = arith.cmpi eq, %29, %32 : vector<8x128xi32>
    %34 = arith.andi %31, %33 : vector<8x128xi1>
    %c0_i32_11 = arith.constant 0 : i32
    %35 = vector.broadcast %c0_i32_11 : i32 to vector<8x128xi32>
    %36 = arith.cmpi eq, %28, %35 : vector<8x128xi32>
    %c1_i32 = arith.constant 1 : i32
    %37 = vector.broadcast %c1_i32 : i32 to vector<8x128xi32>
    %38 = arith.cmpi eq, %29, %37 : vector<8x128xi32>
    %39 = arith.andi %36, %38 : vector<8x128xi1>
    %cst_12 = arith.constant 0.000000e+00 : f32
    %40 = vector.broadcast %27 : f32 to vector<8x128xf32>
    %41 = vector.broadcast %cst_12 : f32 to vector<8x128xf32>
    %42 = arith.select %39, %40, %41 : vector<8x128xi1>, vector<8x128xf32>
    %43 = vector.broadcast %23 : f32 to vector<8x128xf32>
    %44 = arith.select %34, %43, %42 : vector<8x128xi1>, vector<8x128xf32>
    %c0_13 = arith.constant 0 : index
    %c0_14 = arith.constant 0 : index
    %45 = vector.load %arg4[%c0_13, %c0_14] : memref<8x128xf32, #tpu.memory_space<vmem>>, vector<8x128xf32>
    tpu.vector_store %arg4[%c0_13, %c0_14], %44 {strides = array<i32>} : memref<8x128xf32, #tpu.memory_space<vmem>>, vector<8x128xf32>,
    return
  }
  func.func @transform_0(%arg0: i32) -> (i32, i32) {
    %c0_i32 = arith.constant 0 : i32
    %c0_i32_0 = arith.constant 0 : i32
    return %arg0, %c0_i32 : i32, i32
  }
  func.func @transform_1(%arg0: i32) -> (i32, i32) {
    %c0_i32 = arith.constant 0 : i32
    %c0_i32_0 = arith.constant 0 : i32
    return %arg0, %c0_i32 : i32, i32
  }
  func.func @transform_2(%arg0: i32) -> (i32, i32) {
    %c0_i32 = arith.constant 0 : i32
    %c0_i32_0 = arith.constant 0 : i32
    return %arg0, %c0_i32 : i32, i32
  }
  func.func @transform_3(%arg0: i32) -> (i32, i32) {
    %c0_i32 = arith.constant 0 : i32
    %c0_i32_0 = arith.constant 0 : i32
    return %arg0, %c0_i32 : i32, i32
  }
}

</mosaic_0001>

<bundles_post_ra>
// kernel: tpu_custom_call.1
= control target key start
LH: loop header
LB: loop body
LE: loop exit
PB: predicated region body
PF: predicated region fallthrough
CT: control target
= control target key end

     0   :  { %s1026_s0 = inlined_call_operand.hbm [shape: f32[48,128], index: 0, kind: input, shape index: {}]   ;;  %s1027_s1 = inlined_call_operand.hbm [shape: s32[48,1], index: 1, kind: input, shape index: {}]   ;;  %s1028_s2 = inlined_call_operand.hbm [shape: f32[48,1], index: 2, kind: input, shape index: {}]   ;;  %s1029_s3 = inlined_call_operand.hbm [shape: f32[24,128], index: 3, kind: output, shape index: {}]  }
   0x1   :  { %1036 = sst [smem:[#allocation12_spill]] %s1026_s0 }
   0x2   :  { %8 = vsyncpa [#allocation3], 0 }
   0x3   :  { %10 = vsyncpa [#allocation3 + $0x1], 0 }
   0x4   :  { %11 = vsyncpa [#allocation6], 0 }
   0x5   :  { %13 = vsyncpa [#allocation6 + $0x1], 0 }
   0x6   :  { %14 = vsyncpa [#allocation4], 0 }
   0x7   :  { %16 = vsyncpa [#allocation4 + $0x1], 0  ;;  %s763_s12 = smov 0   ;;  %s765_s13 = smov 0  }
   0x8   :  { %s767_s14 = smov 0   ;;  %s769_s15 = smov 0  }
   0x9 LB: > { %s784_s16 = sadd.s32 4294967295, %s734_s15   ;;  %s477_s17 = sadd.s32 4294967294, %s734_s15   ;;  %s734_s15 = sphi %s769_s15, %s1054_s15   ;;  %s730_s14 = sphi %s767_s14, %s1053_s14   ;;  %s726_s13 = sphi %s765_s13, %s1052_s13   ;;  %s722_s12 = sphi %s763_s12, %s1051_s12  }
   0xa   : > { %s788_s18 = sadd.s32 1, %s734_s15   ;;  %s29_s19 = sadd.s32 1, %s730_s14 }
   0xb   : > { %s26_s20 = ssub.s32 %s734_s15, %s788_s18  ;;  %p36_p0 = scmp.ne.s32.totalorder %s730_s14, %s726_s13 }
   0xc   : > { %p27_p1 = scmp.eq.s32.totalorder %s26_s20, 0  ;;  %p37_p2 = scmp.eq.s32.totalorder %s734_s15, 0 }
   0xd   : > { %p42_p3 = scmp.ne.s32.totalorder %s726_s13, %s722_s12  ;;  %p43_p4 = scmp.eq.s32.totalorder %s784_s16, 0 }
   0xe   : > { %s800_s21 = scalar_select %p27_p1, %s730_s14, %s29_s19  }
   0xf   : > { %p38_p5 = por %p37_p2, %p36_p0  ;;  %p802_p6 = por %p43_p4, %p42_p3 }
  0x10   : > { %p118_p7 = scmp.eq.s32.totalorder %s784_s16, 2  ;;  %p124_p8 = scmp.eq.s32.totalorder %s477_s17, 2 }
  0x11   : > { %s1037_s22 = scalar_select %p802_p6, 1, 0 }
  0x12   : > { %p527_p9 = scmp.lt.s32.totalorder %s734_s15, 3  ;;  %p808_p10 = por %p118_p7, %p36_p0 }
  0x13   : > { %p812_p11 = por %p124_p8, %p42_p3  ;;  %s144_s25 = sand.u32 1, %s730_s14  }
  0x14   : > { %s1038_s23 = scalar_select %p808_p10, 1, 0 }
  0x15   : > { %s1039_s24 = scalar_select %p812_p11, 1, 0 }
  0x16   : > { %s818_s26 = sshll.u32 %s734_s15, 8  ;;  %s822_s27 = sshll.u32 %s144_s25, 4 }
  0x17   : > { %p824_p12 = pnand %p527_p9, %p38_p5  ;;  %s165_s29 = sand.u32 1, %s734_s15  }
  0x18   : > { %s833_s5 = scalar_lea.hbm %s1027_s1, %s818_s26  ;;  %s169_s6 = scalar_lea.vmem [#allocation5], %s822_s27 }
  0x19   : > { %s176_s7 = sshll.u32 %s169_s6, 4  ;;  %s839_s8 = scalar_lea.sflag [#allocation6], %s165_s29  ;;  %s836_s7 = int_to_ptr.vmem [resolvable:$true] %s176_s7 }
  0x1a   : > { %s574_s9 = scalar_lea.hbm %s833_s5, 256  ;;  %p845_p1 = pneg %p824_p12 }
  0x1b   : > { %p575_p0 = scmp.ne.s32.totalorder %s833_s5, %s574_s9  ;;  %s579_s19 = scalar_lea.hbm %s1027_s1, 768 }
  0x1c   : > { %p580_p4 = scmp.lt.u32.totalorder %s833_s5, %s1027_s1  ;;  %p581_p5 = scmp.lt.u32.totalorder %s579_s19, %s574_s9 }
  0x1d   : > { %p577_p2 = pnand %p845_p1, %p575_p0  ;;  %p583_p8 = scmp.lt.u32.totalorder %s574_s9, %s833_s5 }
  0x1e   : > { %p582_p7 = por %p581_p5, %p580_p4 }
  0x1f   : > { %p578_p3 = pneg %p577_p2 }
  0x20   : > { %p584_p9 = por %p583_p8, %p582_p7 }
  0x22   : > { %p585_p13 = pnand %p584_p9, %p578_p3 }
  0x24   : > { %588 = shalt.err (!%p585_p13)
}
  0x25   : > { %s589_s29 = scalar_lea.vmem %s836_s7, 256  ;;  %s736_s4 = smov [#allocation5]  }
  0x26   : > { %p590_p0 = scmp.ne.s32.totalorder %s836_s7, %s589_s29  ;;  %s594_s6 = sshll.u32 %s736_s4, 4  ;;  %s595_s6 = int_to_ptr.vmem [resolvable:$false] %s594_s6 }
  0x27   : > { %s596_s11 = scalar_lea.vmem %s595_s6, 512  ;;  %p597_p10 = scmp.lt.s32.totalorder %s836_s7, %s595_s6 }
  0x28   : > { %p592_p2 = pnand %p590_p0, %p845_p1  ;;  %p598_p6 = scmp.lt.s32.totalorder %s596_s11, %s589_s29 }
  0x2a   : > { %p593_p11 = pneg %p592_p2  ;;  %p599_p4 = por %p598_p6, %p597_p10 }
  0x2c   : > { %p600_p5 = pnand %p599_p4, %p593_p11 }
  0x2e   : > { %603 = shalt.err (!%p600_p5)
}
  0x2f   : > { %s1032_s9 = smov 128   ;;  %s1034_s17 = smov 8  }
  0x30   : > { %519 = dma.hbm_to_vmem [thread:$0]  (!%p824_p12), %s833_s5, 256, %s836_s7, %s839_s8, %s1032_s9, %s1032_s9, %s1034_s17  }
  0x31   : > { %p205_p6 = scmp.lt.s32.totalorder %s734_s15, 4  ;;  %s1042_s0 = sld [smem:[#allocation12_spill]] }
  0x32   : > { %p1043_p10 = scmp.ge.s32.totalorder %s734_s15, 1  ;;  %s148_s4 = scalar_lea.vmem [#allocation2], %s822_s27 }
  0x33   : > { %s155_s6 = sshll.u32 %s148_s4, 4  ;;  %s890_s5 = scalar_lea.sflag [#allocation3], %s144_s25  ;;  %s886_s6 = int_to_ptr.vmem [resolvable:$true] %s155_s6 }
  0x34   : > { %p881_p11 = pnand %p1043_p10, %p205_p6 }
  0x36   : > { %s1044_s29 = scalar_select %p881_p11, 1, 0 }
  0x37   : > { %s877_s30 = scalar_lea.hbm %s1042_s0, %s818_s26  ;;  %s609_s20 = scalar_lea.hbm %s1042_s0, 768 }
  0x38   : > { %s604_s7 = scalar_lea.hbm %s877_s30, 256  ;;  %p610_p8 = scmp.lt.u32.totalorder %s877_s30, %s1042_s0 }
  0x39   : > { %p605_p13 = scmp.ne.s32.totalorder %s877_s30, %s604_s7  ;;  %p611_p9 = scmp.lt.u32.totalorder %s609_s20, %s604_s7 }
  0x3a   : > { %p613_p2 = scmp.lt.u32.totalorder %s604_s7, %s877_s30 }
  0x3b   : > { %p607_p3 = pnand %p605_p13, %p845_p1  ;;  %p612_p0 = por %p611_p9, %p610_p8 }
  0x3d   : > { %p608_p7 = pneg %p607_p3  ;;  %p614_p4 = por %p613_p2, %p612_p0 }
  0x3f   : > { %p615_p5 = pnand %p614_p4, %p608_p7 }
  0x41   : > { %618 = shalt.err (!%p615_p5)
}
  0x42   : > { %s619_s25 = scalar_lea.vmem %s886_s6, 256  ;;  %s739_s4 = smov [#allocation2]  }
  0x43   : > { %p620_p6 = scmp.ne.s32.totalorder %s886_s6, %s619_s25  ;;  %s624_s11 = sshll.u32 %s739_s4, 4  ;;  %s625_s11 = int_to_ptr.vmem [resolvable:$false] %s624_s11 }
  0x44   : > { %s626_s9 = scalar_lea.vmem %s625_s11, 512  ;;  %p627_p3 = scmp.lt.s32.totalorder %s886_s6, %s625_s11 }
  0x45   : > { %p622_p10 = pnand %p620_p6, %p845_p1  ;;  %p628_p11 = scmp.lt.s32.totalorder %s626_s9, %s619_s25 }
  0x47   : > { %p623_p13 = pneg %p622_p10  ;;  %p629_p8 = por %p628_p11, %p627_p3 }
  0x49   : > { %p630_p9 = pnand %p629_p8, %p623_p13 }
  0x4b   : > { %633 = shalt.err (!%p630_p9)
}
  0x4c   : > { %s1045_s17 = smov 8   ;;  %s1046_s7 = smov 128  }
  0x4d   : > { %516 = dma.hbm_to_vmem [thread:$0]  (!%p824_p12), %s877_s30, 256, %s886_s6, %s890_s5, %s1046_s7, %s1046_s7, %s1045_s17  }
  0x4e   : > { %s921_s4 = scalar_lea.hbm %s1028_s2, %s818_s26  ;;  %s190_s25 = scalar_lea.vmem [#allocation7], %s822_s27 }
  0x4f   : > { %s197_s11 = sshll.u32 %s190_s25, 4  ;;  %s634_s9 = scalar_lea.hbm %s921_s4, 256  ;;  %s924_s11 = int_to_ptr.vmem [resolvable:$true] %s197_s11 }
  0x50   : > { %p635_p11 = scmp.ne.s32.totalorder %s921_s4, %s634_s9  ;;  %s639_s6 = scalar_lea.hbm %s1028_s2, 768 }
  0x51   : > { %p640_p2 = scmp.lt.u32.totalorder %s921_s4, %s1028_s2  ;;  %p641_p4 = scmp.lt.u32.totalorder %s639_s6, %s634_s9 }
  0x52   : > { %p637_p7 = pnand %p635_p11, %p845_p1  ;;  %p643_p6 = scmp.lt.u32.totalorder %s634_s9, %s921_s4 }
  0x53   : > { %p642_p5 = por %p641_p4, %p640_p2 }
  0x54   : > { %p638_p0 = pneg %p637_p7 }
  0x55   : > { %p644_p10 = por %p643_p6, %p642_p5 }
  0x57   : > { %p645_p13 = pnand %p644_p10, %p638_p0 }
  0x59   : > { %648 = shalt.err (!%p645_p13)
}
  0x5a   : > { %s649_s27 = scalar_lea.vmem %s924_s11, 256  ;;  %s740_s0 = smov [#allocation7]  }
  0x5b   : > { %p650_p3 = scmp.ne.s32.totalorder %s924_s11, %s649_s27  ;;  %s654_s19 = sshll.u32 %s740_s0, 4  ;;  %s655_s19 = int_to_ptr.vmem [resolvable:$false] %s654_s19 }
  0x5c   : > { %s656_s20 = scalar_lea.vmem %s655_s19, 512  ;;  %p657_p11 = scmp.lt.s32.totalorder %s924_s11, %s655_s19 }
  0x5d   : > { %p652_p8 = pnand %p650_p3, %p845_p1  ;;  %p658_p7 = scmp.lt.s32.totalorder %s656_s20, %s649_s27 }
  0x5f   : > { %p653_p9 = pneg %p652_p8  ;;  %p659_p2 = por %p658_p7, %p657_p11 }
  0x61   : > { %p660_p4 = pnand %p659_p2, %p653_p9 }
  0x63   : > { %663 = shalt.err (!%p660_p4)
}
  0x64   : > { %522 = dma.hbm_to_vmem [thread:$0]  (!%p824_p12), %s921_s4, 256, %s924_s11, %s839_s8, %s1046_s7, %s1046_s7, %s1045_s17  }
  0x65   : > { %p1047_p1 = scmp.ne.s32.totalorder %s1044_s29, 0 }
  0x66   : > { %s954_s10 = sand.u32 (!%p1047_p1), 1, %s726_s13   ;;  %p1048_p0 = scmp.ne.s32.totalorder (!%p1047_p1), %s1037_s22, 0 }
  0x67   : > { %209 = sbr.rel (%p1047_p1) target bundleno = 664 (0x298), region = 32  ;;  %s957_s25 = sshll.u32 (!%p1047_p1), %s954_s10, 4 }
  0x68   : > { %s212_s28 = scalar_lea.sflag (!%p1047_p1), [#allocation3], %s954_s10  ;;  %s215_s9 = scalar_lea.vmem (!%p1047_p1), [#allocation2], %s957_s25 }
  0x6e   : > { %709 = dma.done.wait (%p1048_p0), %s212_s28, 256  }
  0x6f   : > { %711 = vsyncadd (%p1048_p0), %s212_s28, 4294967040  ;;  %s220_s8 = sand.u32 1, %s784_s16   ;;  %s224_s17 = scalar_lea.vmem [#allocation5], %s957_s25 }
  0x70   : > { %s221_s29 = scalar_lea.sflag [#allocation6], %s220_s8 }
  0x71   : > { %713 = dma.done.wait (%p1048_p0), %s221_s29, 512  }
  0x72   : > { %715 = vsyncadd (%p1048_p0), %s221_s29, 4294966784  ;;  %v741_v0 = vmov 0   ;;  %v269_v1 = vld [vmem:[%s215_s9] sm:$0xff]  ;;  %v270_v3 = vld [vmem:[%s215_s9 + $0x8] sm:$0xff]  ;;  %v293_v11 = vlaneseq  ;;  %s233_s22 = scalar_lea.vmem [#allocation7], %s957_s25  ;;  %vm313_vm2 = vcmask 7168  }
  0x73   : > { %564 = vset.pattern.permute.xlu1 %v741_v0  ;;  %565 = vset.pattern.permute.xlu0 %v741_v0  ;;  %v271_v2 = vld [vmem:[%s224_s17] sm:$0xff]  ;;  %v272_v4 = vld [vmem:[%s224_s17 + $0x8] sm:$0xff]  ;;  %s493_s7 = sshll.u32 %s954_s10, 3  ;;  %s495_s4 = sshll.u32 %s784_s16, 7 }
  0x74   : > { %275 = vmax.xlane.f32.xlu0 %v269_v1  ;;  %296 = vperm.xlu1 %564, %v271_v2   ;;  %v971_v13 = vand.u32 127, %v293_v11  ;;  %v273_v26 = vld [vmem:[%s233_s22] sm:$0xff]  ;;  %v274_v28 = vld [vmem:[%s233_s22 + $0x8] sm:$0xff]  ;;  %v339_v53 = vshrl.u32 %v293_v11, 7  ;;  %s265_s30 = scalar_lea.vmem [#allocation8], %s493_s7  ;;  %s983_s0 = scalar_lea.hbm %s1029_s3, %s495_s4 }
  0x75   : > { %v326_v35 = vsel %vm313_vm2, %v273_v26, 0.0  ;;  %v327_v36 = vsel %vm313_vm2, %v274_v28, 0.0  ;;  %s364_s6 = sshll.u32 %s265_s30, 4  ;;  %s351_s16 = scalar_lea.sflag [#allocation4], %s954_s10  ;;  %s985_s6 = int_to_ptr.vmem [resolvable:$true] %s364_s6 }
  0x76   : > { %v328_v38 = vadd.f32 %v327_v36, %v326_v35  ;;  %vm340_vm3 = vcmp.eq.s32.totalorder %v339_v53, 0  ;;  %vm343_vm4 = vcmp.eq.s32.totalorder %v971_v13, 1  ;;  %vm341_vm5 = vcmp.eq.s32.totalorder %v971_v13, 0  ;;  %s664_s19 = scalar_lea.vmem %s985_s6, 128  ;;  %p1049_p5 = scmp.ne.s32.totalorder %s1038_s23, 0 }
  0x77   : > { %vm344_vm6 = vmand %vm340_vm3, %vm343_vm4  ;;  %p665_p12 = scmp.ne.s32.totalorder %s985_s6, %s664_s19  ;;  %s742_s20 = smov [#allocation8]  }
  0x78   : > { %277 = vmax.xlane.f32.xlu0 %v270_v3  ;;  %299 = vperm.xlu1 %564, %v272_v4   ;;  %vm342_vm7 = vmand %vm340_vm3, %vm341_vm5  ;;  %s668_s25 = sshll.u32 %s742_s20, 4  ;;  %s669_s25 = int_to_ptr.vmem [resolvable:$false] %s668_s25 }
  0x79   : > { %p666_p6 = pnand %p665_p12, %p1049_p5  ;;  %s670_s28 = scalar_lea.vmem %s669_s25, 256 }
  0x7a   : > { %p671_p13 = scmp.lt.s32.totalorder %s985_s6, %s669_s25  ;;  %p672_p3 = scmp.lt.s32.totalorder %s670_s28, %s664_s19 }
  0x7b   : > { %p667_p10 = pneg %p666_p6 }
  0x7c   : > { %p673_p8 = por %p672_p3, %p671_p13 }
  0x7e   : > { %p674_p9 = pnand %p673_p8, %p667_p10 }
  0xf3   : > { %v297_v12 = vpop.permute.xlu1 %296 }
  0xf4   : > { %vm301_vm0 = vcmp.eq.s32.totalorder %v971_v13, %v297_v12 }
  0xf7   : > { %v300_v15 = vpop.permute.xlu1 %299 }
  0xf8   : > { %vm302_vm1 = vcmp.eq.s32.totalorder %v971_v13, %v300_v15 }
 0x101   : > { %v276_v5 = vpop.xlane.xlu0 %275 }
 0x102   : > { %v279_v6 = vsub.f32 %v269_v1, %v276_v5 }
 0x104   : > { %v281_v7 = vmul.f32 1.442695, %v279_v6  ;;  %v303_v17 = vsel %vm301_vm0, %v279_v6, 0.0 }
 0x105   : > { %v278_v8 = vpop.xlane.xlu0 %277 }
 0x106   : > { %566 = vpow2.f32 %v281_v7  ;;  %v280_v9 = vsub.f32 %v270_v3, %v278_v8 }
 0x108   : > { %v283_v10 = vmul.f32 1.442695, %v280_v9  ;;  %v304_v18 = vsel %vm302_vm1, %v280_v9, 0.0 }
 0x10a   : > { %568 = vpow2.f32 %v283_v10 }
 0x110   : > { %v567_v14 = vpop.eup %566 }
 0x111   : > { %285 = vadd.xlane.f32.xlu0 %v567_v14 }
 0x114   : > { %v569_v16 = vpop.eup %568 }
 0x115   : > { %305 = vadd.xlane.f32.xlu0 %v303_v17  ;;  %287 = vadd.xlane.f32.xlu1 %v569_v16 }
 0x119   : > { %307 = vadd.xlane.f32.xlu0 %v304_v18 }
 0x19e   : > { %v286_v19 = vpop.xlane.xlu0 %285 }
 0x19f   : > { %570 = vlog2.f32 %v286_v19 }
 0x1a2   : > { %v288_v20 = vpop.xlane.xlu1 %287  ;;  %v306_v22 = vpop.xlane.xlu0 %305 }
 0x1a3   : > { %572 = vlog2.f32 %v288_v20 }
 0x1a6   : > { %v308_v29 = vpop.xlane.xlu0 %307 }
 0x1a9   : > { %v571_v21 = vpop.eup %570 }
 0x1aa   : > { %v290_v23 = vmul.f32 0.6931472, %v571_v21 }
 0x1ac   : > { %v309_v24 = vsub.f32 %v290_v23, %v306_v22 }
 0x1ad   : > { %v573_v25 = vpop.eup %572 }
 0x1ae   : > { %v292_v27 = vmul.f32 0.6931472, %v573_v25  ;;  %v311_v30 = vmul.f32 %v309_v24, %v273_v26 }
 0x1b0   : > { %v310_v31 = vsub.f32 %v292_v27, %v308_v29  ;;  %v314_v33 = vsel %vm313_vm2, %v311_v30, 0.0 }
 0x1b2   : > { %v312_v32 = vmul.f32 %v310_v31, %v274_v28 }
 0x1b4   : > { %v315_v34 = vsel %vm313_vm2, %v312_v32, 0.0 }
 0x1b5   : > { %v316_v37 = vadd.f32 %v315_v34, %v314_v33 }
 0x1b7   : > { %317 = vadd.xlane.f32.xlu0 %v316_v37 }
 0x1bb   : > { %329 = vadd.xlane.f32.xlu0 %v328_v38 }
 0x244   : > { %v318_v39 = vpop.xlane.xlu0 %317 }
 0x245   : > { %v319_v40 = vrot.slane %v318_v39, 4 }
 0x247   : > { %v320_v41 = vadd.f32 %v319_v40, %v318_v39 }
 0x248   : > { %v330_v42 = vpop.xlane.xlu0 %329 }
 0x249   : > { %v321_v43 = vrot.slane %v320_v41, 2  ;;  %v331_v44 = vrot.slane %v330_v42, 4 }
 0x24b   : > { %v332_v45 = vadd.f32 %v331_v44, %v330_v42  ;;  %v322_v46 = vadd.f32 %v321_v43, %v320_v41 }
 0x24d   : > { %v333_v47 = vrot.slane %v332_v45, 2  ;;  %v323_v48 = vrot.slane %v322_v46, 1 }
 0x24f   : > { %v334_v49 = vadd.f32 %v333_v47, %v332_v45  ;;  %v324_v50 = vadd.f32 %v323_v48, %v322_v46 }
 0x251   : > { %501 = vpush %v324_v50  ;;  %v335_v51 = vrot.slane %v334_v49, 1 }
 0x253   : > { %v336_v52 = vadd.f32 %v335_v51, %v334_v49 }
 0x255   : > { %503 = vpush %v336_v52 }
 0x282   : > { %s502_s11 = spop %501 }
 0x283   : > { %v347_v55 = vstv %s502_s11 }
 0x286   : > { %s504_s5 = spop %503 }
 0x287   : > { %v345_v54 = vstv %s504_s5 }
 0x288   : > { %v346_v56 = vsel %vm344_vm6, %v345_v54, 0.0 }
 0x289   : > { %v348_v57 = vsel %vm342_vm7, %v347_v55, %v346_v56 }
 0x28a   : > { %349 = vst [vmem:[%s265_s30] sm:$0xff] %v348_v57 }
 0x28b   : > { %677 = shalt.err (!%p674_p9)
}
 0x28c   : > { %s678_s10 = scalar_lea.hbm %s983_s0, 128  ;;  %s682_s29 = scalar_lea.hbm %s1029_s3, 384 }
 0x28d   : > { %p679_p11 = scmp.ne.s32.totalorder %s983_s0, %s678_s10  ;;  %p683_p4 = scmp.lt.u32.totalorder %s983_s0, %s1029_s3 }
 0x28e   : > { %p684_p1 = scmp.lt.u32.totalorder %s682_s29, %s678_s10  ;;  %p686_p12 = scmp.lt.u32.totalorder %s678_s10, %s983_s0 }
 0x28f   : > { %p680_p7 = pnand %p679_p11, %p1049_p5 }
 0x290   : > { %p685_p0 = por %p684_p1, %p683_p4 }
 0x291   : > { %p681_p2 = pneg %p680_p7 }
 0x292   : > { %p687_p6 = por %p686_p12, %p685_p0 }
 0x294   : > { %p688_p10 = pnand %p687_p6, %p681_p2 }
 0x296   : > { %691 = shalt.err (!%p688_p10)
}
 0x297   : > { %511 = dma.vmem_to_hbm [thread:$0]  (%p1049_p5), %s985_s6, 128, %s983_s0, %s351_s16  }
 0x298 PF: > { %p528_p13 = scmp.ge.s32.totalorder %s734_s15, 2  ;;  %s376_s7 = sand.u32 1, %s722_s12  }
 0x299   : > { %p1050_p3 = scmp.ne.s32.totalorder %s1039_s24, 0  ;;  %s377_s4 = scalar_lea.sflag [#allocation4], %s376_s7 }
 0x29b   : > { %p524_p8 = pnand %p528_p13, %p1050_p3 }
 0x29d   : > { %717 = dma.done.wait (!%p524_p8), %s377_s4, 128  }
 0x29e   : > { %719 = vsyncadd (!%p524_p8), %s377_s4, 4294967168  ;;  %p19_p9 = scmp.ge.s32.totalorder %s788_s18, 5   ;;  %s1051_s12 = smov %s726_s13 }
 0x29f   : > { %s1052_s13 = smov %s730_s14  ;;  %s1053_s14 = smov %s800_s21 }
 0x2a0   : > { %s1054_s15 = smov %s788_s18  ;;  %21 = sbr.rel (!%p19_p9) target bundleno = 9 (0x9), region = 101 }
 0x2a7   :  { %382 = vsyncpa [#allocation3], 1 }
 0x2a8   :  { %384 = vsyncpa [#allocation3 + $0x1], 1 }
 0x2a9   :  { %385 = vsyncpa [#allocation6], 1 }
 0x2aa   :  { %387 = vsyncpa [#allocation6 + $0x1], 1 }
 0x2ab   :  { %388 = vsyncpa [#allocation4], 1 }
 0x2ac   :  { %390 = vsyncpa [#allocation4 + $0x1], 1 }

</bundles_post_ra>
